<compile_context>
chip_gen: v5e
topology: v5e:2x2
jax: 0.10.0
libtpu: 0.0.40
codegen_flags: <defaults>
</compile_context>

<pallas_src>
import jax
import jax.numpy as jnp
from jax.experimental import pallas as pl
from jax.experimental.pallas import tpu as pltpu

LANE = 128            # TPU lane width (last-dim vreg width)
SUBLANE = 8           # f32 sublane height
DEFAULT_TILE_B = 256  # >=256 fills v6e/v7x MXU rows; multiple of 8 for f32


def _round_up(x, m):
    return (x + m - 1) // m * m


def mlp_kernel(x_ref, w1_ref, b1_ref, w2_ref, b2_ref, w3_ref, b3_ref,
               w4_ref, b4_ref, out_ref):
    # layer1: (TB, D_in) @ (D_in, 128) + (1, 128) -> relu
    h = jnp.dot(x_ref[...], w1_ref[...], preferred_element_type=jnp.float32)
    h = jnp.maximum(h + b1_ref[...], 0.0)
    # layer2: (TB, 128) @ (128, 128) + (1, 128) -> relu
    h = jnp.dot(h, w2_ref[...], preferred_element_type=jnp.float32)
    h = jnp.maximum(h + b2_ref[...], 0.0)
    # layer3 (padded to 128 lanes): (TB, 128) @ (128, 128) + (1, 128) -> relu
    h = jnp.dot(h, w3_ref[...], preferred_element_type=jnp.float32)
    h = jnp.maximum(h + b3_ref[...], 0.0)
    # layer4 (padded to 128 lanes): (TB, 128) @ (128, 128) + (1, 128), no act
    h = jnp.dot(h, w4_ref[...], preferred_element_type=jnp.float32)
    out_ref[...] = (h + b4_ref[...]).astype(out_ref.dtype)


def neural_network_forward(x, params, *, tile_b=DEFAULT_TILE_B):
    """x: (B, input_size) float32. params: dict of weights (in,out) / biases (1,out)."""
    B, d_in = x.shape
    num_classes = params["w4"].shape[1]
    h3 = params["w3"].shape[1]

    # --- Lane-dense padding of the narrow layer-3 hidden and the output. ---
    h3_pad = _round_up(h3, LANE)
    c_pad = _round_up(num_classes, LANE)
    w3 = jnp.pad(params["w3"], ((0, 0), (0, h3_pad - h3)))
    b3 = jnp.pad(params["b3"], ((0, 0), (0, h3_pad - h3)))
    w4 = jnp.pad(params["w4"], ((0, h3_pad - h3), (0, c_pad - num_classes)))
    b4 = jnp.pad(params["b4"], ((0, 0), (0, c_pad - num_classes)))
    w1, b1 = params["w1"], params["b1"]
    w2, b2 = params["w2"], params["b2"]

    # --- Adaptive batch tile: never pad a tiny batch out to a full 256 tile. ---
    tile_b = min(tile_b, _round_up(B, SUBLANE))
    tile_b = _round_up(tile_b, SUBLANE)

    # --- Pad batch to a whole number of tiles (no ragged remainder tile). ---
    b_pad = _round_up(max(B, tile_b), tile_b)
    if b_pad != B:
        x = jnp.pad(x, ((0, b_pad - B), (0, 0)))
    grid = (b_pad // tile_b,)

    # Weights/biases: constant index_map -> fetched once, VMEM-resident.
    def resident(a):
        return pl.BlockSpec(a.shape, lambda i: (0, 0))

    flops = 2 * b_pad * (d_in * 128 + 128 * 128 + 128 * h3_pad + h3_pad * c_pad)
    bytes_accessed = 4 * (x.size + w1.size + b1.size + w2.size + b2.size
                          + w3.size + b3.size + w4.size + b4.size
                          + b_pad * c_pad)

    out = pl.pallas_call(
        mlp_kernel,
        out_shape=jax.ShapeDtypeStruct((b_pad, c_pad), jnp.float32),
        grid=grid,
        in_specs=[
            pl.BlockSpec((tile_b, d_in), lambda i: (i, 0)),
            resident(w1), resident(b1),
            resident(w2), resident(b2),
            resident(w3), resident(b3),
            resident(w4), resident(b4),
        ],
        out_specs=pl.BlockSpec((tile_b, c_pad), lambda i: (i, 0)),
        compiler_params=pltpu.CompilerParams(
            dimension_semantics=("parallel",)),
        cost_estimate=pl.CostEstimate(
            flops=flops, transcendentals=0, bytes_accessed=bytes_accessed),
    )(x, w1, b1, w2, b2, w3, b3, w4, b4)

    return out[:B, :num_classes]


def init_params(key, input_size, num_classes):
    """Deterministic init mimicking PyTorch nn.Linear default (U(-1/sqrt(fan_in), +))."""
    dims = [(input_size, 128), (128, 128), (128, 32), (32, num_classes)]
    params = {}
    for idx, (fan_in, fan_out) in enumerate(dims, start=1):
        key, kw, kb = jax.random.split(key, 3)
        bound = 1.0 / (fan_in ** 0.5)
        # stored as (in, out): transpose of PyTorch's (out, in) weight
        params[f"w{idx}"] = jax.random.uniform(
            kw, (fan_in, fan_out), jnp.float32, -bound, bound)
        params[f"b{idx}"] = jax.random.uniform(
            kb, (1, fan_out), jnp.float32, -bound, bound)
    return params


def reference_forward(x, params):
    h = jnp.maximum(x @ params["w1"] + params["b1"], 0.0)
    h = jnp.maximum(h @ params["w2"] + params["b2"], 0.0)
    h = jnp.maximum(h @ params["w3"] + params["b3"], 0.0)
    return h @ params["w4"] + params["b4"]


if __name__ == "__main__":
    key = jax.random.PRNGKey(0)
    input_size = 64      # flow-vector feature length (flat vector input)
    num_classes = 4
    batch = 8

    k_params, k_x = jax.random.split(key)
    params = init_params(k_params, input_size, num_classes)
    x = jax.random.normal(k_x, (batch, input_size), jnp.float32)

    out = neural_network_forward(x, params)
    jax.block_until_ready(out)

    ref = reference_forward(x, params)
    assert out.shape == (batch, num_classes)
    assert jnp.allclose(out, ref, atol=1e-4, rtol=1e-4)

    # Also exercise the multi-tile path (batch > TILE_B) to validate the grid.
    k_big = jax.random.PRNGKey(1)
    x_big = jax.random.normal(k_big, (300, input_size), jnp.float32)
    out_big = neural_network_forward(x_big, params)
    jax.block_until_ready(out_big)
    assert out_big.shape == (300, num_classes)
    assert jnp.allclose(out_big, reference_forward(x_big, params),
                        atol=1e-4, rtol=1e-4)

    print("KERNEL_OK")
</pallas_src>

<mosaic_0001>
module attributes {stable_mosaic.version = 11 : i64} {
  func.func @mlp_kernel(%arg0: i32, %arg1: memref<8x64xf32, #tpu.memory_space<vmem>>, %arg2: memref<64x128xf32, #tpu.memory_space<vmem>>, %arg3: memref<1x128xf32, #tpu.memory_space<vmem>>, %arg4: memref<128x128xf32, #tpu.memory_space<vmem>>, %arg5: memref<1x128xf32, #tpu.memory_space<vmem>>, %arg6: memref<128x128xf32, #tpu.memory_space<vmem>>, %arg7: memref<1x128xf32, #tpu.memory_space<vmem>>, %arg8: memref<128x128xf32, #tpu.memory_space<vmem>>, %arg9: memref<1x128xf32, #tpu.memory_space<vmem>>, %arg10: memref<8x128xf32, #tpu.memory_space<vmem>>) attributes {dimension_semantics = [#tpu.dimension_semantics<parallel>], iteration_bounds = array<i64: 1>, scalar_prefetch = 0 : i64, scratch_operands = 0 : i64, tpu.core_type = #tpu.core_type<tc>, window_params = [{transform_indices = @transform_0, window_bounds = array<i64: 8, 64>}, {pipeline_mode = #tpu.pipeline_mode<synchronous>, transform_indices = @transform_1, window_bounds = array<i64: 64, 128>}, {pipeline_mode = #tpu.pipeline_mode<synchronous>, transform_indices = @transform_2, window_bounds = array<i64: 1, 128>}, {pipeline_mode = #tpu.pipeline_mode<synchronous>, transform_indices = @transform_3, window_bounds = array<i64: 128, 128>}, {pipeline_mode = #tpu.pipeline_mode<synchronous>, transform_indices = @transform_4, window_bounds = array<i64: 1, 128>}, {pipeline_mode = #tpu.pipeline_mode<synchronous>, transform_indices = @transform_5, window_bounds = array<i64: 128, 128>}, {pipeline_mode = #tpu.pipeline_mode<synchronous>, transform_indices = @transform_6, window_bounds = array<i64: 1, 128>}, {pipeline_mode = #tpu.pipeline_mode<synchronous>, transform_indices = @transform_7, window_bounds = array<i64: 128, 128>}, {pipeline_mode = #tpu.pipeline_mode<synchronous>, transform_indices = @transform_8, window_bounds = array<i64: 1, 128>}, {transform_indices = @transform_9, window_bounds = array<i64: 8, 128>}]} {
    %c0 = arith.constant 0 : index
    %c0_0 = arith.constant 0 : index
    %0 = vector.load %arg1[%c0, %c0_0] : memref<8x64xf32, #tpu.memory_space<vmem>>, vector<8x64xf32>
    %c0_1 = arith.constant 0 : index
    %c0_2 = arith.constant 0 : index
    %1 = vector.load %arg2[%c0_1, %c0_2] : memref<64x128xf32, #tpu.memory_space<vmem>>, vector<64x128xf32>
    %cst = arith.constant dense<0.000000e+00> : vector<8x128xf32>
    %2 = tpu.matmul %0, %1, %cst {dimension_numbers = #tpu.dot_dimension_numbers<[1], [0], [0], [1], [0, 0, 1, 1], [], []>} : vector<8x64xf32>, vector<64x128xf32>, vector<8x128xf32> -> vector<8x128xf32>
    %c0_3 = arith.constant 0 : index
    %c0_4 = arith.constant 0 : index
    %3 = vector.load %arg3[%c0_3, %c0_4] : memref<1x128xf32, #tpu.memory_space<vmem>>, vector<1x128xf32>
    %4 = vector.broadcast %3 : vector<1x128xf32> to vector<8x128xf32>
    %5 = arith.addf %2, %4 : vector<8x128xf32>
    %cst_5 = arith.constant 0.000000e+00 : f32
    %6 = vector.broadcast %cst_5 : f32 to vector<8x128xf32>
    %7 = arith.maximumf %5, %6 : vector<8x128xf32>
    %c0_6 = arith.constant 0 : index
    %c0_7 = arith.constant 0 : index
    %8 = vector.load %arg4[%c0_6, %c0_7] : memref<128x128xf32, #tpu.memory_space<vmem>>, vector<128x128xf32>
    %cst_8 = arith.constant dense<0.000000e+00> : vector<8x128xf32>
    %9 = tpu.matmul %7, %8, %cst_8 {dimension_numbers = #tpu.dot_dimension_numbers<[1], [0], [0], [1], [0, 0, 1, 1], [], []>} : vector<8x128xf32>, vector<128x128xf32>, vector<8x128xf32> -> vector<8x128xf32>
    %c0_9 = arith.constant 0 : index
    %c0_10 = arith.constant 0 : index
    %10 = vector.load %arg5[%c0_9, %c0_10] : memref<1x128xf32, #tpu.memory_space<vmem>>, vector<1x128xf32>
    %11 = vector.broadcast %10 : vector<1x128xf32> to vector<8x128xf32>
    %12 = arith.addf %9, %11 : vector<8x128xf32>
    %cst_11 = arith.constant 0.000000e+00 : f32
    %13 = vector.broadcast %cst_11 : f32 to vector<8x128xf32>
    %14 = arith.maximumf %12, %13 : vector<8x128xf32>
    %c0_12 = arith.constant 0 : index
    %c0_13 = arith.constant 0 : index
    %15 = vector.load %arg6[%c0_12, %c0_13] : memref<128x128xf32, #tpu.memory_space<vmem>>, vector<128x128xf32>
    %cst_14 = arith.constant dense<0.000000e+00> : vector<8x128xf32>
    %16 = tpu.matmul %14, %15, %cst_14 {dimension_numbers = #tpu.dot_dimension_numbers<[1], [0], [0], [1], [0, 0, 1, 1], [], []>} : vector<8x128xf32>, vector<128x128xf32>, vector<8x128xf32> -> vector<8x128xf32>
    %c0_15 = arith.constant 0 : index
    %c0_16 = arith.constant 0 : index
    %17 = vector.load %arg7[%c0_15, %c0_16] : memref<1x128xf32, #tpu.memory_space<vmem>>, vector<1x128xf32>
    %18 = vector.broadcast %17 : vector<1x128xf32> to vector<8x128xf32>
    %19 = arith.addf %16, %18 : vector<8x128xf32>
    %cst_17 = arith.constant 0.000000e+00 : f32
    %20 = vector.broadcast %cst_17 : f32 to vector<8x128xf32>
    %21 = arith.maximumf %19, %20 : vector<8x128xf32>
    %c0_18 = arith.constant 0 : index
    %c0_19 = arith.constant 0 : index
    %22 = vector.load %arg8[%c0_18, %c0_19] : memref<128x128xf32, #tpu.memory_space<vmem>>, vector<128x128xf32>
    %cst_20 = arith.constant dense<0.000000e+00> : vector<8x128xf32>
    %23 = tpu.matmul %21, %22, %cst_20 {dimension_numbers = #tpu.dot_dimension_numbers<[1], [0], [0], [1], [0, 0, 1, 1], [], []>} : vector<8x128xf32>, vector<128x128xf32>, vector<8x128xf32> -> vector<8x128xf32>
    %c0_21 = arith.constant 0 : index
    %c0_22 = arith.constant 0 : index
    %24 = vector.load %arg9[%c0_21, %c0_22] : memref<1x128xf32, #tpu.memory_space<vmem>>, vector<1x128xf32>
    %25 = vector.broadcast %24 : vector<1x128xf32> to vector<8x128xf32>
    %26 = arith.addf %23, %25 : vector<8x128xf32>
    %c0_23 = arith.constant 0 : index
    %c0_24 = arith.constant 0 : index
    %27 = vector.load %arg10[%c0_23, %c0_24] : memref<8x128xf32, #tpu.memory_space<vmem>>, vector<8x128xf32>
    tpu.vector_store %arg10[%c0_23, %c0_24], %26 {strides = array<i32>} : memref<8x128xf32, #tpu.memory_space<vmem>>, vector<8x128xf32>,
    return
  }
  func.func @transform_0(%arg0: i32) -> (i32, i32) {
    %c0_i32 = arith.constant 0 : i32
    %c0_i32_0 = arith.constant 0 : i32
    return %arg0, %c0_i32 : i32, i32
  }
  func.func @transform_1(%arg0: i32) -> (i32, i32) {
    %c0_i32 = arith.constant 0 : i32
    %c0_i32_0 = arith.constant 0 : i32
    %c0_i32_1 = arith.constant 0 : i32
    return %c0_i32, %c0_i32_0 : i32, i32
  }
  func.func @transform_2(%arg0: i32) -> (i32, i32) {
    %c0_i32 = arith.constant 0 : i32
    %c0_i32_0 = arith.constant 0 : i32
    %c0_i32_1 = arith.constant 0 : i32
    return %c0_i32, %c0_i32_0 : i32, i32
  }
  func.func @transform_3(%arg0: i32) -> (i32, i32) {
    %c0_i32 = arith.constant 0 : i32
    %c0_i32_0 = arith.constant 0 : i32
    %c0_i32_1 = arith.constant 0 : i32
    return %c0_i32, %c0_i32_0 : i32, i32
  }
  func.func @transform_4(%arg0: i32) -> (i32, i32) {
    %c0_i32 = arith.constant 0 : i32
    %c0_i32_0 = arith.constant 0 : i32
    %c0_i32_1 = arith.constant 0 : i32
    return %c0_i32, %c0_i32_0 : i32, i32
  }
  func.func @transform_5(%arg0: i32) -> (i32, i32) {
    %c0_i32 = arith.constant 0 : i32
    %c0_i32_0 = arith.constant 0 : i32
    %c0_i32_1 = arith.constant 0 : i32
    return %c0_i32, %c0_i32_0 : i32, i32
  }
  func.func @transform_6(%arg0: i32) -> (i32, i32) {
    %c0_i32 = arith.constant 0 : i32
    %c0_i32_0 = arith.constant 0 : i32
    %c0_i32_1 = arith.constant 0 : i32
    return %c0_i32, %c0_i32_0 : i32, i32
  }
  func.func @transform_7(%arg0: i32) -> (i32, i32) {
    %c0_i32 = arith.constant 0 : i32
    %c0_i32_0 = arith.constant 0 : i32
    %c0_i32_1 = arith.constant 0 : i32
    return %c0_i32, %c0_i32_0 : i32, i32
  }
  func.func @transform_8(%arg0: i32) -> (i32, i32) {
    %c0_i32 = arith.constant 0 : i32
    %c0_i32_0 = arith.constant 0 : i32
    %c0_i32_1 = arith.constant 0 : i32
    return %c0_i32, %c0_i32_0 : i32, i32
  }
  func.func @transform_9(%arg0: i32) -> (i32, i32) {
    %c0_i32 = arith.constant 0 : i32
    %c0_i32_0 = arith.constant 0 : i32
    return %arg0, %c0_i32 : i32, i32
  }
}

</mosaic_0001>

<bundles_post_ra>
// kernel: tpu_custom_call.1
= control target key start
LH: loop header
LB: loop body
LE: loop exit
PB: predicated region body
PF: predicated region fallthrough
CT: control target
= control target key end

     0   :  { %14 = vsyncpa [#allocation3], 0  ;;  %s542_s0 = inlined_call_operand.hbm [shape: f32[8,64], index: 0, kind: input, shape index: {}]   ;;  %s543_s1 = inlined_call_operand.hbm [shape: f32[64,128], index: 1, kind: input, shape index: {}]   ;;  %s544_s2 = inlined_call_operand.vmem [shape: f32[1,128], index: 2, kind: input, shape index: {}]   ;;  %s545_s3 = inlined_call_operand.hbm [shape: f32[128,128], index: 3, kind: input, shape index: {}]   ;;  %s546_s4 = inlined_call_operand.vmem [shape: f32[1,128], index: 4, kind: input, shape index: {}]   ;;  %s547_s5 = inlined_call_operand.hbm [shape: f32[128,128], index: 5, kind: input, shape index: {}]   ;;  %s548_s6 = inlined_call_operand.vmem [shape: f32[1,128], index: 6, kind: input, shape index: {}]   ;;  %s549_s7 = inlined_call_operand.hbm [shape: f32[128,128], index: 7, kind: input, shape index: {}]   ;;  %s550_s8 = inlined_call_operand.vmem [shape: f32[1,128], index: 8, kind: input, shape index: {}]   ;;  %s551_s9 = inlined_call_operand.hbm [shape: f32[8,128], index: 9, kind: output, shape index: {}]  }
   0x1   :  { %15 = vsyncpa [#allocation6], 0 }
   0x2   :  { %16 = vsyncpa [#allocation9], 0  ;;  %s33_s11 = sshll.u32 %s543_s1, 4  ;;  %s34_s11 = int_to_ptr.hbm [resolvable:$true] %s33_s11 }
   0x3   :  { %17 = vsyncpa [#allocation4], 0  ;;  %s454_s12 = smov [#allocation5]   ;;  %s63_s16 = sshll.u32 %s547_s5, 4  ;;  %s64_s16 = int_to_ptr.hbm [resolvable:$true] %s63_s16 }
   0x4   :  { %s35_s13 = sshll.u32 %s454_s12, 4  ;;  %s455_s17 = smov 128   ;;  %s36_s13 = int_to_ptr.vmem [resolvable:$true] %s35_s13 }
   0x5   :  { %s456_s18 = smov 8   ;;  %s457_s19 = smov [#allocation8]  }
   0x6   :  { %41 = dma.hbm_to_vmem [thread:$0]  %s34_s11, 1024, %s36_s13, [#allocation6], %s455_s17, %s455_s17, %s456_s18  }
   0x7   :  { %s65_s20 = sshll.u32 %s457_s19, 4  ;;  %s23_s23 = sshll.u32 %s542_s0, 4  ;;  %s66_s20 = int_to_ptr.vmem [resolvable:$true] %s65_s20  ;;  %s24_s23 = int_to_ptr.hbm [resolvable:$true] %s23_s23 }
   0x8   :  { %71 = dma.hbm_to_vmem [thread:$0]  %s64_s16, 2048, %s66_s20, [#allocation9], %s455_s17, %s455_s17, %s456_s18  }
   0x9   :  { %s48_s25 = sshll.u32 %s545_s3, 4  ;;  %s458_s26 = smov [#allocation2]   ;;  %s49_s25 = int_to_ptr.hbm [resolvable:$true] %s48_s25 }
   0xa   :  { %s25_s27 = sshll.u32 %s458_s26, 4  ;;  %s459_s5 = smov [#allocation7]   ;;  %s26_s27 = int_to_ptr.vmem [resolvable:$true] %s25_s27 }
   0xb   :  { %28 = dma.hbm_to_vmem [thread:$0]  %s24_s23, 128, %s26_s27, [#allocation3]  }
   0xc   :  { %s50_s28 = sshll.u32 %s459_s5, 4  ;;  %s78_s10 = sshll.u32 %s549_s7, 4  ;;  %s51_s28 = int_to_ptr.vmem [resolvable:$true] %s50_s28  ;;  %s79_s10 = int_to_ptr.hbm [resolvable:$true] %s78_s10 }
   0xd   :  { %56 = dma.hbm_to_vmem [thread:$0]  %s49_s25, 2048, %s51_s28, [#allocation6], %s455_s17, %s455_s17, %s456_s18  }
   0xe   :  { %s460_s0 = smov [#allocation10]  }
   0xf   :  { %s80_s11 = sshll.u32 %s460_s0, 4  ;;  %s81_s11 = int_to_ptr.vmem [resolvable:$true] %s80_s11 }
  0x10   :  { %86 = dma.hbm_to_vmem [thread:$0]  %s79_s10, 2048, %s81_s11, [#allocation9], %s455_s17, %s455_s17, %s456_s18  }
  0x11   :  { %446 = dma.done.wait [#allocation3], 128  }
  0x12   :  { %447 = vsyncadd [#allocation3], 4294967168 }
  0x13   :  { %448 = dma.done.wait [#allocation6], 3072  }
  0x14   :  { %449 = vsyncadd [#allocation6], 4294964224 }
  0x15   :  { %450 = dma.done.wait [#allocation9], 4096  }
  0x16   :  { %451 = vsyncadd [#allocation9], 4294963200  ;;  %v117_v0 = vld [vmem:[#allocation5 + $0x38] sm:$0xff]  ;;  %v116_v1 = vld [vmem:[#allocation5 + $0x30] sm:$0xff]  ;;  %vm122_vm0 = vcmask 523264   ;;  %s461_s16 = smov [#allocation11]  }
  0x17   :  { %134 = vmatpush.msra.mxu0 %v117_v0  ;;  %v115_v2 = vld [vmem:[#allocation5 + $0x28] sm:$0xff]  ;;  %v162_v3 = vld [vmem:[#allocation7 + $0x78] sm:$0xff]  ;;  %v161_v4 = vld [vmem:[#allocation7 + $0x70] sm:$0xff]  ;;  %s275_s17 = sshll.u32 %s461_s16, 4  ;;  %s277_s20 = sshll.u32 %s551_s9, 4  ;;  %s276_s17 = int_to_ptr.vmem [resolvable:$true] %s275_s17  ;;  %s278_s20 = int_to_ptr.hbm [resolvable:$true] %s277_s20 }
  0x18   :  { %v114_v5 = vld [vmem:[#allocation5 + $0x20] sm:$0xff]  ;;  %167 = vmatpush.msra.mxu1 %v162_v3  ;;  %v160_v6 = vld [vmem:[#allocation7 + $0x68] sm:$0xff]  ;;  %v113_v7 = vld [vmem:[#allocation5 + $0x18] sm:$0xff] }
  0x19   :  { %135 = vmatpush.msra.mxu0 %v116_v1  ;;  %v112_v8 = vld [vmem:[#allocation5 + $0x10] sm:$0xff]  ;;  %v159_v9 = vld [vmem:[#allocation7 + $0x60] sm:$0xff]  ;;  %v158_v10 = vld [vmem:[#allocation7 + $0x58] sm:$0xff] }
  0x1a   :  { %168 = vmatpush.msra.mxu1 %v161_v4  ;;  %v111_v11 = vld [vmem:[#allocation5 + $0x8] sm:$0xff]  ;;  %v157_v12 = vld [vmem:[#allocation7 + $0x50] sm:$0xff]  ;;  %v110_v13 = vld [vmem:[#allocation5] sm:$0xff] }
  0x1b   :  { %136 = vmatpush.msra.mxu0 %v115_v2  ;;  %v109_v14 = vld [vmem:[#allocation2] sm:$0xff]  ;;  %v156_v15 = vld [vmem:[#allocation7 + $0x48] sm:$0xff]  ;;  %v155_v16 = vld [vmem:[#allocation7 + $0x40] sm:$0xff] }
  0x1c   :  { %169 = vmatpush.msra.mxu1 %v160_v6  ;;  %v154_v17 = vld [vmem:[#allocation7 + $0x38] sm:$0xff]  ;;  %v153_v18 = vld [vmem:[#allocation7 + $0x30] sm:$0xff]  ;;  %v152_v19 = vld [vmem:[#allocation7 + $0x28] sm:$0xff] }
  0x1d   :  { %137 = vmatpush.msra.mxu0 %v114_v5  ;;  %v151_v20 = vld [vmem:[#allocation7 + $0x20] sm:$0xff]  ;;  %v150_v21 = vld [vmem:[#allocation7 + $0x18] sm:$0xff]  ;;  %v149_v22 = vld [vmem:[#allocation7 + $0x10] sm:$0xff] }
  0x1e   :  { %170 = vmatpush.msra.mxu1 %v159_v9  ;;  %v148_v23 = vld [vmem:[#allocation7 + $0x8] sm:$0xff]  ;;  %v147_v24 = vld [vmem:[#allocation7] sm:$0xff]  ;;  %v203_v25 = vld [vmem:[#allocation8 + $0x78] sm:$0xff] }
  0x1f   :  { %138 = vmatpush.msra.mxu0 %v113_v7  ;;  %v202_v26 = vld [vmem:[#allocation8 + $0x70] sm:$0xff]  ;;  %208 = vmatpush.msra.mxu2 %v203_v25  ;;  %v201_v27 = vld [vmem:[#allocation8 + $0x68] sm:$0xff]  ;;  %v200_v28 = vld [vmem:[#allocation8 + $0x60] sm:$0xff] }
  0x20   :  { %171 = vmatpush.msra.mxu1 %v158_v10  ;;  %v199_v29 = vld [vmem:[#allocation8 + $0x58] sm:$0xff]  ;;  %v198_v30 = vld [vmem:[#allocation8 + $0x50] sm:$0xff]  ;;  %v197_v31 = vld [vmem:[#allocation8 + $0x48] sm:$0xff] }
  0x21   :  { %139 = vmatpush.msra.mxu0 %v112_v8  ;;  %209 = vmatpush.msra.mxu2 %v202_v26  ;;  %v196_v32 = vld [vmem:[#allocation8 + $0x40] sm:$0xff]  ;;  %v195_v33 = vld [vmem:[#allocation8 + $0x38] sm:$0xff]  ;;  %v194_v34 = vld [vmem:[#allocation8 + $0x30] sm:$0xff] }
  0x22   :  { %172 = vmatpush.msra.mxu1 %v157_v12  ;;  %v193_v35 = vld [vmem:[#allocation8 + $0x28] sm:$0xff]  ;;  %v192_v36 = vld [vmem:[#allocation8 + $0x20] sm:$0xff]  ;;  %v191_v37 = vld [vmem:[#allocation8 + $0x18] sm:$0xff] }
  0x23   :  { %140 = vmatpush.msra.mxu0 %v111_v11  ;;  %210 = vmatpush.msra.mxu2 %v201_v27  ;;  %v298_v38 = vld [vmem:[%s544_s2] ss:$0 sm:$0xff]  ;;  %v190_v42 = vld [vmem:[#allocation8 + $0x10] sm:$0xff]  ;;  %v189_v43 = vld [vmem:[#allocation8 + $0x8] sm:$0xff] }
  0x24   :  { %173 = vmatpush.msra.mxu1 %v156_v15  ;;  %v188_v44 = vld [vmem:[#allocation8] sm:$0xff]  ;;  %v244_v45 = vld [vmem:[#allocation10 + $0x78] sm:$0xff]  ;;  %v243_v46 = vld [vmem:[#allocation10 + $0x70] sm:$0xff] }
  0x25   :  { %141 = vmatpush.msra.mxu0 %v110_v13  ;;  %211 = vmatpush.msra.mxu2 %v200_v28  ;;  %v242_v47 = vld [vmem:[#allocation10 + $0x68] sm:$0xff]  ;;  %v241_v48 = vld [vmem:[#allocation10 + $0x60] sm:$0xff]  ;;  %v240_v49 = vld [vmem:[#allocation10 + $0x58] sm:$0xff] }
  0x26   :  { %289 = vmatmul.msk.f32.vlgmr.msra.gmra.mxu0 %vm122_vm0, %v109_v14  ;;  %174 = vmatpush.msra.mxu1 %v155_v16  ;;  %v239_v50 = vld [vmem:[#allocation10 + $0x50] sm:$0xff]  ;;  %v238_v51 = vld [vmem:[#allocation10 + $0x48] sm:$0xff]  ;;  %v237_v52 = vld [vmem:[#allocation10 + $0x40] sm:$0xff] }
  0x27   :  { %212 = vmatpush.msra.mxu2 %v199_v29  ;;  %249 = vmatpush.msra.mxu3 %v244_v45  ;;  %v236_v53 = vld [vmem:[#allocation10 + $0x38] sm:$0xff]  ;;  %v235_v54 = vld [vmem:[#allocation10 + $0x30] sm:$0xff]  ;;  %v234_v55 = vld [vmem:[#allocation10 + $0x28] sm:$0xff] }
  0x28   :  { %175 = vmatpush.msra.mxu1 %v154_v17  ;;  %v233_v56 = vld [vmem:[#allocation10 + $0x20] sm:$0xff]  ;;  %v232_v57 = vld [vmem:[#allocation10 + $0x18] sm:$0xff]  ;;  %v231_v62 = vld [vmem:[#allocation10 + $0x10] sm:$0xff] }
  0x29   :  { %213 = vmatpush.msra.mxu2 %v198_v30  ;;  %250 = vmatpush.msra.mxu3 %v243_v46  ;;  %v299_v58 = vld [vmem:[%s546_s4] ss:$0 sm:$0xff]  ;;  %v230_v63 = vld [vmem:[#allocation10 + $0x8] sm:$0xff]  ;;  %v229_v0 = vld [vmem:[#allocation10] sm:$0xff] }
  0x2a   :  { %176 = vmatpush.msra.mxu1 %v153_v18  ;;  %v300_v1 = vld [vmem:[%s548_s6] ss:$0 sm:$0xff] }
  0x2b   :  { %214 = vmatpush.msra.mxu2 %v197_v31  ;;  %251 = vmatpush.msra.mxu3 %v242_v47  ;;  %v301_v5 = vld [vmem:[%s550_s8] ss:$0 sm:$0xff] }
  0x2c   :  { %177 = vmatpush.msra.mxu1 %v152_v19 }
  0x2d   :  { %215 = vmatpush.msra.mxu2 %v196_v32  ;;  %252 = vmatpush.msra.mxu3 %v241_v48 }
  0x2e   :  { %178 = vmatpush.msra.mxu1 %v151_v20 }
  0x2f   :  { %216 = vmatpush.msra.mxu2 %v195_v33  ;;  %253 = vmatpush.msra.mxu3 %v240_v49 }
  0x30   :  { %179 = vmatpush.msra.mxu1 %v150_v21 }
  0x31   :  { %217 = vmatpush.msra.mxu2 %v194_v34  ;;  %254 = vmatpush.msra.mxu3 %v239_v50 }
  0x32   :  { %180 = vmatpush.msra.mxu1 %v149_v22 }
  0x33   :  { %218 = vmatpush.msra.mxu2 %v193_v35  ;;  %255 = vmatpush.msra.mxu3 %v238_v51 }
  0x34   :  { %181 = vmatpush.msra.mxu1 %v148_v23 }
  0x35   :  { %219 = vmatpush.msra.mxu2 %v192_v36  ;;  %256 = vmatpush.msra.mxu3 %v237_v52 }
  0x36   :  { %182 = vmatpush.msra.mxu1 %v147_v24 }
  0x37   :  { %220 = vmatpush.msra.mxu2 %v191_v37  ;;  %257 = vmatpush.msra.mxu3 %v236_v53 }
  0x39   :  { %221 = vmatpush.msra.mxu2 %v190_v42  ;;  %258 = vmatpush.msra.mxu3 %v235_v54 }
  0x3b   :  { %222 = vmatpush.msra.mxu2 %v189_v43  ;;  %259 = vmatpush.msra.mxu3 %v234_v55 }
  0x3d   :  { %223 = vmatpush.msra.mxu2 %v188_v44  ;;  %260 = vmatpush.msra.mxu3 %v233_v56 }
  0x3f   :  { %261 = vmatpush.msra.mxu3 %v232_v57 }
  0x41   :  { %262 = vmatpush.msra.mxu3 %v231_v62 }
  0x43   :  { %263 = vmatpush.msra.mxu3 %v230_v63 }
  0x45   :  { %264 = vmatpush.msra.mxu3 %v229_v0 }
  0xa3   :  { %v143_v39 = vpop.f32.mrf.mxu0 }
  0xa4   :  { %v144_v40 = vadd.f32 %v298_v38, %v143_v39 }
  0xa6   :  { %v146_v41 = vmax.f32 %v144_v40, 0.0 }
  0xa8   :  { %183 = vmatmul.f32.vlgmr.msra.gmra.mxu1 %v146_v41 }
 0x125   :  { %v184_v59 = vpop.f32.mrf.mxu1 }
 0x126   :  { %v185_v60 = vadd.f32 %v299_v58, %v184_v59 }
 0x128   :  { %v187_v61 = vmax.f32 %v185_v60, 0.0 }
 0x12a   :  { %224 = vmatmul.f32.vlgmr.msra.gmra.mxu2 %v187_v61 }
 0x1ad   :  { %v225_v2 = vpop.f32.mrf.mxu2 }
 0x1ae   :  { %v226_v3 = vadd.f32 %v300_v1, %v225_v2 }
 0x1b0   :  { %v228_v4 = vmax.f32 %v226_v3, 0.0 }
 0x1b2   :  { %265 = vmatmul.f32.vlgmr.msra.gmra.mxu3 %v228_v4 }
 0x235   :  { %v266_v6 = vpop.f32.mrf.mxu3 }
 0x236   :  { %v267_v7 = vadd.f32 %v301_v5, %v266_v6 }
 0x238   :  { %269 = vst [vmem:[#allocation11] sm:$0xff] %v267_v7 }
 0x239   :  { %280 = dma.vmem_to_hbm [thread:$0]  %s276_s17, 128, %s278_s20, [#allocation4]  }
 0x23a   :  { %452 = dma.done.wait [#allocation4], 128  }
 0x23b   :  { %453 = vsyncadd [#allocation4], 4294967168 }
 0x23c   :  { %285 = vsyncpa [#allocation3], 1 }
 0x23d   :  { %286 = vsyncpa [#allocation6], 1 }
 0x23e   :  { %287 = vsyncpa [#allocation9], 1 }
 0x23f   :  { %288 = vsyncpa [#allocation4], 1 }

</bundles_post_ra>
